<compile_context>
chip_gen: v7x
topology: tpu7x:2x2x1
jax: 0.10.0
libtpu: 0.0.40
codegen_flags: <defaults>
</compile_context>

<pallas_src>
import functools

import jax
import jax.numpy as jnp
from jax.experimental import pallas as pl
from jax.experimental.pallas import tpu as pltpu

LANE = 128
SUBLANE = 8


def _round_up(n, m):
    return (n + m - 1) // m * m


def dqn_kernel(x_ref, w1_ref, bias_ref, w2_ref, out_ref):
    Hp = w1_ref.shape[1]
    Op = w2_ref.shape[1]
    # Cast x to bf16 in-kernel (VPU, hidden under DMA); MXU matmul, f32 acc.
    xb = x_ref[...].astype(jnp.bfloat16)
    h = jnp.dot(xb, w1_ref[...], preferred_element_type=jnp.float32)
    h = jnp.maximum(h + bias_ref[0:1, :Hp], 0.0)
    # Layer 2: hidden back to bf16 for the MXU, accumulate in f32.
    o = jnp.dot(h.astype(jnp.bfloat16), w2_ref[...],
                preferred_element_type=jnp.float32)
    # bf16 store: halves output HBM writeback (the binding traffic term).
    out_ref[...] = (o + bias_ref[1:2, :Op]).astype(out_ref.dtype)


def prepare_params(w1, b1, w2, b2):
    """One-time parameter prep: bf16 cast + zero-pad hidden/output dims to 128
    multiples (lane-dense MXU tiles, unmasked stores) + pack both biases into a
    single (2, max(Hp, Op)) f32 VMEM-resident buffer (one DMA operand)."""
    K, H = w1.shape
    _, O = w2.shape
    Hp = _round_up(H, LANE)
    Op = _round_up(O, LANE)
    Bp = max(Hp, Op)
    w1p = jnp.zeros((K, Hp), jnp.bfloat16).at[:, :H].set(w1.astype(jnp.bfloat16))
    w2p = jnp.zeros((Hp, Op), jnp.bfloat16).at[:H, :O].set(w2.astype(jnp.bfloat16))
    bias = jnp.zeros((2, Bp), jnp.float32)
    bias = bias.at[0, :H].set(b1.reshape(-1).astype(jnp.float32))
    bias = bias.at[1, :O].set(b2.reshape(-1).astype(jnp.float32))
    return w1p, bias, w2p


@functools.partial(jax.jit, static_argnames=("out_features", "block_b"))
def deep_q_network(x, w1p, bias, w2p, out_features, block_b=2048):
    """Fused MLP forward: relu(x @ w1 + b1) @ w2 + b2 (padded, bf16 MXU)."""
    B, K = x.shape
    Hp = w1p.shape[1]
    Op = w2p.shape[1]
    Bp = bias.shape[1]

    # Balanced batch tiling:
    #   * >= 2 grid steps whenever B > 8 so the "parallel" axis actually
    #     shards across both TensorCores on v7x (no-op on v5e/v6e),
    #   * tile rows a multiple of 8 (sublane), capped near block_b,
    #   * padding waste bounded by sublane rounding (no near-2x blowup when
    #     B is just above a multiple of the tile size).
    n_tiles = max(pl.cdiv(B, block_b), 2) if B > SUBLANE else 1
    blk = _round_up(pl.cdiv(B, n_tiles), SUBLANE)
    B_pad = _round_up(B, blk)
    nb = B_pad // blk

    xp = x if B_pad == B else jnp.pad(x, ((0, B_pad - B), (0, 0)))

    out = pl.pallas_call(
        dqn_kernel,
        out_shape=jax.ShapeDtypeStruct((B_pad, Op), jnp.bfloat16),
        grid=(nb,),
        in_specs=[
            pl.BlockSpec((blk, K), lambda i: (i, 0)),   # x: tiled over batch (f32)
            pl.BlockSpec((K, Hp), lambda i: (0, 0)),    # w1: VMEM-resident
            pl.BlockSpec((2, Bp), lambda i: (0, 0)),    # packed biases: resident
            pl.BlockSpec((Hp, Op), lambda i: (0, 0)),   # w2: VMEM-resident
        ],
        out_specs=pl.BlockSpec((blk, Op), lambda i: (i, 0)),
        compiler_params=pltpu.CompilerParams(
            dimension_semantics=("parallel",)),
    )(xp, w1p, bias, w2p)
    # Tiny (B, out_features) slice; cast back to f32 to match PyTorch output.
    return out[:B, :out_features].astype(jnp.float32)


def reference(x, w1, b1, w2, b2):
    h = jnp.maximum(x @ w1 + b1, 0.0)
    return h @ w2 + b2


if __name__ == "__main__":
    # Shapes implied by DeepQNetwork(input_size, hidden_size, output_size)
    batch, input_size, hidden_size, output_size = 16, 16, 32, 4

    key = jax.random.PRNGKey(0)
    k1, k2, k3, k4, k5 = jax.random.split(key, 5)
    x = jax.random.normal(k1, (batch, input_size), dtype=jnp.float32)
    # Deterministic synthetic parameters (exact init distribution does not
    # affect forward-pass semantics). Stored as (in, out) = PyTorch weight.T.
    w1 = jax.random.normal(k2, (input_size, hidden_size), dtype=jnp.float32) * 0.1
    b1 = jax.random.normal(k3, (hidden_size,), dtype=jnp.float32) * 0.1
    w2 = jax.random.normal(k4, (hidden_size, output_size), dtype=jnp.float32) * 0.1
    b2 = jax.random.normal(k5, (output_size,), dtype=jnp.float32) * 0.1

    w1p, bias, w2p = prepare_params(w1, b1, w2, b2)

    out = deep_q_network(x, w1p, bias, w2p, output_size)
    jax.block_until_ready(out)

    ref = reference(x, w1, b1, w2, b2)
    assert out.shape == (batch, output_size)
    # bf16 MXU operands + bf16 store -> looser tolerance vs. f32 reference.
    assert jnp.allclose(out, ref, atol=2e-2, rtol=2e-2), "mismatch vs reference"
    print("KERNEL_OK")
</pallas_src>

<mosaic_0001>
module attributes {stable_mosaic.version = 11 : i64} {
  func.func @dqn_kernel(%arg0: i32, %arg1: memref<8x16xf32, #tpu.memory_space<vmem>>, %arg2: memref<16x128xbf16, #tpu.memory_space<vmem>>, %arg3: memref<2x128xf32, #tpu.memory_space<vmem>>, %arg4: memref<128x128xbf16, #tpu.memory_space<vmem>>, %arg5: memref<8x128xbf16, #tpu.memory_space<vmem>>) attributes {dimension_semantics = [#tpu.dimension_semantics<parallel>], iteration_bounds = array<i64: 2>, scalar_prefetch = 0 : i64, scratch_operands = 0 : i64, tpu.core_type = #tpu.core_type<tc>, window_params = [{transform_indices = @transform_0, window_bounds = array<i64: 8, 16>}, {pipeline_mode = #tpu.pipeline_mode<synchronous>, transform_indices = @transform_1, window_bounds = array<i64: 16, 128>}, {pipeline_mode = #tpu.pipeline_mode<synchronous>, transform_indices = @transform_2, window_bounds = array<i64: 2, 128>}, {pipeline_mode = #tpu.pipeline_mode<synchronous>, transform_indices = @transform_3, window_bounds = array<i64: 128, 128>}, {transform_indices = @transform_4, window_bounds = array<i64: 8, 128>}]} {
    %c0 = arith.constant 0 : index
    %c0_0 = arith.constant 0 : index
    %0 = vector.load %arg1[%c0, %c0_0] : memref<8x16xf32, #tpu.memory_space<vmem>>, vector<8x16xf32>
    %1 = arith.truncf %0 : vector<8x16xf32> to vector<8x16xbf16>
    %c0_1 = arith.constant 0 : index
    %c0_2 = arith.constant 0 : index
    %2 = vector.load %arg2[%c0_1, %c0_2] : memref<16x128xbf16, #tpu.memory_space<vmem>>, vector<16x128xbf16>
    %cst = arith.constant dense<0.000000e+00> : vector<8x128xf32>
    %3 = tpu.matmul %1, %2, %cst {dimension_numbers = #tpu.dot_dimension_numbers<[1], [0], [0], [1], [0, 0, 1, 1], [], []>} : vector<8x16xbf16>, vector<16x128xbf16>, vector<8x128xf32> -> vector<8x128xf32>
    %c0_3 = arith.constant 0 : index
    %c0_4 = arith.constant 0 : index
    %4 = vector.load %arg3[%c0_3, %c0_4] : memref<2x128xf32, #tpu.memory_space<vmem>>, vector<1x128xf32>
    %5 = vector.broadcast %4 : vector<1x128xf32> to vector<8x128xf32>
    %6 = arith.addf %3, %5 : vector<8x128xf32>
    %cst_5 = arith.constant 0.000000e+00 : f32
    %7 = vector.broadcast %cst_5 : f32 to vector<8x128xf32>
    %8 = arith.maximumf %6, %7 : vector<8x128xf32>
    %9 = arith.truncf %8 : vector<8x128xf32> to vector<8x128xbf16>
    %c0_6 = arith.constant 0 : index
    %c0_7 = arith.constant 0 : index
    %10 = vector.load %arg4[%c0_6, %c0_7] : memref<128x128xbf16, #tpu.memory_space<vmem>>, vector<128x128xbf16>
    %cst_8 = arith.constant dense<0.000000e+00> : vector<8x128xf32>
    %11 = tpu.matmul %9, %10, %cst_8 {dimension_numbers = #tpu.dot_dimension_numbers<[1], [0], [0], [1], [0, 0, 1, 1], [], []>} : vector<8x128xbf16>, vector<128x128xbf16>, vector<8x128xf32> -> vector<8x128xf32>
    %c1 = arith.constant 1 : index
    %c0_9 = arith.constant 0 : index
    %12 = vector.load %arg3[%c1, %c0_9] : memref<2x128xf32, #tpu.memory_space<vmem>>, vector<1x128xf32>
    %13 = vector.broadcast %12 : vector<1x128xf32> to vector<8x128xf32>
    %14 = arith.addf %11, %13 : vector<8x128xf32>
    %15 = arith.truncf %14 : vector<8x128xf32> to vector<8x128xbf16>
    %c0_10 = arith.constant 0 : index
    %c0_11 = arith.constant 0 : index
    %16 = vector.load %arg5[%c0_10, %c0_11] : memref<8x128xbf16, #tpu.memory_space<vmem>>, vector<8x128xbf16>
    tpu.vector_store %arg5[%c0_10, %c0_11], %15 {strides = array<i32>} : memref<8x128xbf16, #tpu.memory_space<vmem>>, vector<8x128xbf16>,
    return
  }
  func.func @transform_0(%arg0: i32) -> (i32, i32) {
    %c0_i32 = arith.constant 0 : i32
    %c0_i32_0 = arith.constant 0 : i32
    return %arg0, %c0_i32 : i32, i32
  }
  func.func @transform_1(%arg0: i32) -> (i32, i32) {
    %c0_i32 = arith.constant 0 : i32
    %c0_i32_0 = arith.constant 0 : i32
    %c0_i32_1 = arith.constant 0 : i32
    return %c0_i32, %c0_i32_0 : i32, i32
  }
  func.func @transform_2(%arg0: i32) -> (i32, i32) {
    %c0_i32 = arith.constant 0 : i32
    %c0_i32_0 = arith.constant 0 : i32
    %c0_i32_1 = arith.constant 0 : i32
    return %c0_i32, %c0_i32_0 : i32, i32
  }
  func.func @transform_3(%arg0: i32) -> (i32, i32) {
    %c0_i32 = arith.constant 0 : i32
    %c0_i32_0 = arith.constant 0 : i32
    %c0_i32_1 = arith.constant 0 : i32
    return %c0_i32, %c0_i32_0 : i32, i32
  }
  func.func @transform_4(%arg0: i32) -> (i32, i32) {
    %c0_i32 = arith.constant 0 : i32
    %c0_i32_0 = arith.constant 0 : i32
    return %arg0, %c0_i32 : i32, i32
  }
}

</mosaic_0001>

<bundles_post_ra>
// kernel: deep_q_network.1
= control target key start
LH: loop header
LB: loop body
LE: loop exit
PB: predicated region body
PF: predicated region fallthrough
CT: control target
= control target key end

     0   :  { %9 = vsyncpa [#allocation3], 0  ;;  %s971_s0 = inlined_call_operand.hbm [shape: f32[16,16], index: 0, kind: input, shape index: {}]   ;;  %s972_s1 = inlined_call_operand.hbm [shape: bf16[16,128], index: 1, kind: input, shape index: {}]   ;;  %s973_s2 = inlined_call_operand.vmem [shape: f32[2,128], index: 2, kind: input, shape index: {}]   ;;  %s974_s3 = inlined_call_operand.hbm [shape: bf16[128,128], index: 3, kind: input, shape index: {}]   ;;  %s975_s4 = inlined_call_operand.vmem [shape: bf16[16,128], index: 4, kind: output, shape index: {}]  }
   0x1   :  { %11 = vsyncpa [#allocation3 + $0x1], 0 }
   0x2   :  { %12 = vsyncpa [#allocation5], 0  ;;  %s793_s15 = smov 0   ;;  %s795_s16 = smov 0  }
   0x3   :  { %s797_s17 = smov 0   ;;  %s799_s18 = smov 0  }
   0x4 LB: > { %s812_s19 = sadd.s32 4294967295, %s759_s18   ;;  %p38_p0 = scmp.ne.s32.totalorder %s751_s16, %s747_s15  ;;  %s759_s18 = sphi %s799_s18, %s990_s18   ;;  %s755_s17 = sphi %s797_s17, %s989_s17   ;;  %s751_s16 = sphi %s795_s16, %s988_s16   ;;  %s747_s15 = sphi %s793_s15, %s987_s15  }
   0x5   : > { %p976_p1 = scmp.eq.s32.totalorder %s812_s19, 0  ;;  %p500_p2 = scmp.ge.s32.totalorder %s759_s18, 1 }
   0x6   : > { %p138_p3 = scmp.lt.s32.totalorder %s759_s18, 3  ;;  %s761_s22 = smov [#allocation4]  }
   0x7   : > { %p820_p4 = por %p976_p1, %p38_p0  ;;  %s150_s23 = sshll.u32 %s761_s22, 4  ;;  %s151_s23 = int_to_ptr.vmem [resolvable:$true] %s150_s23 }
   0x8   : > { %p824_p5 = pnand %p500_p2, %p138_p3  ;;  %s762_s25 = smov [#allocation6]  }
   0x9   : > { %s979_s20 = scalar_select %p820_p4, 1, 0 }
   0xa   : > { %s980_s21 = scalar_select %p824_p5, 1, 0 }
   0xb   : > { %p572_p6 = pneg %p824_p5  ;;  %s166_s26 = sshll.u32 %s762_s25, 4  ;;  %s836_s26 = int_to_ptr.vmem [resolvable:$true] %s166_s26 }
   0xc   : > { %s635_s29 = scalar_lea.hbm %s972_s1, 128 }
   0xd   : > { %p832_p7 = pnand %p572_p6, %p976_p1  ;;  %p636_p8 = scmp.ne.s32.totalorder %s972_s1, %s635_s29 }
   0xe   : > { %p642_p12 = scmp.lt.u32.totalorder %s635_s29, %s972_s1 }
   0xf   : > { %p637_p9 = pneg %p832_p7 }
  0x11   : > { %p638_p10 = pnand %p637_p9, %p636_p8 }
  0x13   : > { %p639_p11 = pneg %p638_p10 }
  0x15   : > { %p644_p13 = pnand %p642_p12, %p639_p11 }
  0x17   : > { %647 = shalt.err (!%p644_p13)
}
  0x18   : > { %s648_s8 = scalar_lea.vmem %s151_s23, 128  ;;  %p656_p6 = scmp.lt.s32.totalorder %s151_s23, %s151_s23 }
  0x19   : > { %p649_p0 = scmp.ne.s32.totalorder %s151_s23, %s648_s8  ;;  %p657_p1 = scmp.lt.s32.totalorder %s648_s8, %s648_s8 }
  0x1b   : > { %p651_p2 = pnand %p649_p0, %p637_p9  ;;  %p658_p4 = por %p657_p1, %p656_p6 }
  0x1d   : > { %p652_p3 = pneg %p651_p2 }
  0x1f   : > { %p659_p5 = pnand %p658_p4, %p652_p3 }
  0x21   : > { %662 = shalt.err (!%p659_p5)
}
  0x22   : > { %s763_s9 = smov 64   ;;  %s764_s10 = smov 4  }
  0x23   : > { %575 = dma.hbm_to_vmem [thread:$0]  (!%p832_p7), %s972_s1, 128, %s151_s23, [#allocation5], %s763_s9, %s763_s9, %s764_s10  }
  0x24   : > { %s663_s15 = scalar_lea.hbm %s974_s3, 1024 }
  0x25   : > { %p664_p8 = scmp.ne.s32.totalorder %s974_s3, %s663_s15  ;;  %p670_p5 = scmp.lt.u32.totalorder %s663_s15, %s974_s3 }
  0x27   : > { %p666_p1 = pnand %p664_p8, %p637_p9 }
  0x29   : > { %p667_p4 = pneg %p666_p1 }
  0x2b   : > { %p672_p10 = pnand %p670_p5, %p667_p4 }
  0x2d   : > { %675 = shalt.err (!%p672_p10)
}
  0x2e   : > { %s676_s23 = scalar_lea.vmem %s836_s26, 1024  ;;  %p684_p0 = scmp.lt.s32.totalorder %s836_s26, %s836_s26 }
  0x2f   : > { %p677_p11 = scmp.ne.s32.totalorder %s836_s26, %s676_s23  ;;  %p685_p2 = scmp.lt.s32.totalorder %s676_s23, %s676_s23 }
  0x31   : > { %p679_p12 = pnand %p677_p11, %p637_p9  ;;  %p686_p3 = por %p685_p2, %p684_p0 }
  0x33   : > { %p680_p13 = pneg %p679_p12 }
  0x35   : > { %p687_p6 = pnand %p686_p3, %p680_p13 }
  0x37   : > { %690 = shalt.err (!%p687_p6)
}
  0x38   : > { %578 = dma.hbm_to_vmem [thread:$0]  (!%p832_p7), %s974_s3, 1024, %s836_s26, [#allocation5], %s763_s9, %s763_s9, %s764_s10  }
  0x39   : > { %s886_s5 = sadd.s32 1, %s759_s18   ;;  %s25_s6 = sadd.s32 1, %s755_s17 }
  0x3a   : > { %s22_s24 = ssub.s32 %s759_s18, %s886_s5  ;;  %p32_p9 = scmp.ne.s32.totalorder %s755_s17, %s751_s16 }
  0x3b   : > { %p23_p8 = scmp.eq.s32.totalorder %s22_s24, 0  ;;  %p33_p1 = scmp.eq.s32.totalorder %s759_s18, 0 }
  0x3c   : > { %p585_p4 = scmp.lt.s32.totalorder %s759_s18, 2  ;;  %s180_s7 = sand.u32 1, %s755_s17  }
  0x3d   : > { %s897_s8 = scalar_select %p23_p8, %s755_s17, %s25_s6  }
  0x3e   : > { %p34_p5 = por %p33_p1, %p32_p9  ;;  %s504_s11 = sshll.u32 %s180_s7, 3 }
  0x3f   : > { %s505_s12 = sshll.u32 %s759_s18, 7  ;;  %s184_s26 = scalar_lea.vmem [#allocation2], %s504_s11 }
  0x40   : > { %s903_s15 = scalar_lea.hbm %s971_s0, %s505_s12  ;;  %s191_s9 = sshll.u32 %s184_s26, 4  ;;  %s909_s9 = int_to_ptr.vmem [resolvable:$true] %s191_s9 }
  0x41   : > { %p905_p7 = pnand %p585_p4, %p34_p5  ;;  %s181_s18 = scalar_lea.sflag [#allocation3], %s180_s7 }
  0x42   : > { %s691_s22 = scalar_lea.hbm %s903_s15, 128  ;;  %s696_s28 = scalar_lea.hbm %s971_s0, 256 }
  0x43   : > { %p692_p10 = scmp.ne.s32.totalorder %s903_s15, %s691_s22  ;;  %p693_p11 = pneg %p905_p7 }
  0x44   : > { %p697_p0 = scmp.lt.u32.totalorder %s903_s15, %s971_s0  ;;  %p698_p2 = scmp.lt.u32.totalorder %s696_s28, %s691_s22 }
  0x45   : > { %p694_p12 = pnand %p693_p11, %p692_p10  ;;  %p700_p6 = scmp.lt.u32.totalorder %s691_s22, %s903_s15 }
  0x46   : > { %p699_p3 = por %p698_p2, %p697_p0 }
  0x47   : > { %p695_p13 = pneg %p694_p12 }
  0x48   : > { %p701_p9 = por %p700_p6, %p699_p3 }
  0x4a   : > { %p702_p8 = pnand %p701_p9, %p695_p13 }
  0x4c   : > { %705 = shalt.err (!%p702_p8)
}
  0x4d   : > { %s706_s30 = scalar_lea.vmem %s909_s9, 128  ;;  %s765_s6 = smov [#allocation2]  }
  0x4e   : > { %p707_p1 = scmp.ne.s32.totalorder %s909_s9, %s706_s30  ;;  %s711_s24 = sshll.u32 %s765_s6, 4  ;;  %s712_s24 = int_to_ptr.vmem [resolvable:$false] %s711_s24 }
  0x4f   : > { %s713_s7 = scalar_lea.vmem %s712_s24, 256  ;;  %p714_p10 = scmp.lt.s32.totalorder %s909_s9, %s712_s24 }
  0x50   : > { %p709_p4 = pnand %p707_p1, %p693_p11  ;;  %p715_p12 = scmp.lt.s32.totalorder %s713_s7, %s706_s30 }
  0x52   : > { %p710_p5 = pneg %p709_p4  ;;  %p716_p0 = por %p715_p12, %p714_p10 }
  0x54   : > { %p717_p2 = pnand %p716_p0, %p710_p5 }
  0x56   : > { %720 = shalt.err (!%p717_p2)
}
  0x57   : > { %582 = dma.hbm_to_vmem [thread:$0]  (!%p905_p7), %s903_s15, 128, %s909_s9, %s181_s18  }
  0x58   : > { %p983_p13 = scmp.ne.s32.totalorder %s980_s21, 0 }
  0x59   : > { %s202_s11 = sand.u32 (!%p983_p13), 1, %s751_s16   ;;  %p984_p11 = scmp.ne.s32.totalorder (!%p983_p13), %s979_s20, 0 }
  0x5a   : > { %200 = sbr.rel (%p983_p13) target bundleno = 542 (0x21e), region = 36  ;;  %s507_s12 = sshll.u32 (!%p983_p13), %s202_s11, 3 }
  0x5b   : > { %s203_s13 = scalar_lea.sflag (!%p983_p13), [#allocation3], %s202_s11  ;;  %s206_s14 = scalar_lea.vmem (!%p983_p13), [#allocation2], %s507_s12 }
  0x61   : > { %738 = dma.done.wait (%p984_p11), %s203_s13, 128  }
  0x62   : > { %740 = vsyncadd (%p984_p11), %s203_s13, 4294967168  ;;  %p985_p3 = scmp.eq.s32.totalorder %s812_s19, 0 }
  0x64   : > { %742 = dma.done.wait (%p985_p3), [#allocation5], 1152   ;;  %p986_p6 = pmov %p985_p3 }
  0x65   : > { %v766_v0 = vmov 0.0   ;;  %vm767_vm0 = vmmov 0   ;;  %v626_v1 = vld [vmem:[#allocation4] sm:$0xff]   ;;  %v243_v2 = vld [vmem:[%s206_s14] sm:$0xff]  ;;  %vm258_vm1 = vcmask 130048   ;;  %v627_v4 = vld [vmem:[#allocation6] sm:$0xff]  }
  0x66   : > { %744 = vsyncadd (%p986_p6), [#allocation5], 4294966144  ;;  %536 = vmatprep.subr.bf16.mxu0 %v766_v0  ;;  %538 = vmatprep.mubr.msk.bf16.mxu0 %vm767_vm0, %v766_v0  ;;  %v244_v3 = vpack.c.bf16 %v243_v2, %v243_v2  ;;  %v628_v5 = vld [vmem:[#allocation6 + $0x8] sm:$0xff]   ;;  %v629_v6 = vld [vmem:[#allocation6 + $0x10] sm:$0xff]   ;;  %p238_p7 = scmp.lt.s32.totalorder %s812_s19, 1 }
  0x67   : > { %542 = vmatprep.subr.bf16.mxu1 %v766_v0  ;;  %558 = vmatprep.mubr.msk.bf16.mxu1 %vm767_vm0, %v766_v0  ;;  %v630_v7 = vld [vmem:[#allocation6 + $0x18] sm:$0xff]   ;;  %v631_v8 = vld [vmem:[#allocation6 + $0x20] sm:$0xff]   ;;  %v632_v9 = vld [vmem:[#allocation6 + $0x28] sm:$0xff]  }
  0x68   : > { %537 = vmatpush3.bf16.msra.mxu0 %v626_v1  ;;  %543 = vmatpush3.bf16.msra.mxu1 %v627_v4  ;;  %v633_v10 = vld [vmem:[#allocation6 + $0x30] sm:$0xff]   ;;  %v634_v11 = vld [vmem:[#allocation6 + $0x38] sm:$0xff]   ;;  %v511_v12 = vld [vmem:[%s973_s2] ss:$0 sm:$0xff]  ;;  %s992_s19 = smov (!%p238_p7, %s812_s19), 1 }
  0x69   : > { %544 = vmatprep.subr.bf16.mxu1 %v766_v0  ;;  %v514_v20 = vld [vmem:[%s973_s2 + $0x1] ss:$0 sm:$0xff]  ;;  %s510_s9 = sshll.u32 %s992_s19, 2 }
  0x6a   : > { %s241_s22 = scalar_lea.vmem %s975_s4, %s510_s9 }
  0x6b   : > { %539 = vmatmul.mubr.msk.bf16.vlgmr.msra.gmra.mrb[0].mxu0 %vm258_vm1, %v244_v3 }
  0x6c   : > { %545 = vmatpush3.bf16.msra.mxu1 %v628_v5 }
  0x6d   : > { %546 = vmatprep.subr.bf16.mxu1 %v766_v0 }
  0x70   : > { %547 = vmatpush3.bf16.msra.mxu1 %v629_v6 }
  0x71   : > { %548 = vmatprep.subr.bf16.mxu1 %v766_v0 }
  0x74   : > { %549 = vmatpush3.bf16.msra.mxu1 %v630_v7 }
  0x75   : > { %550 = vmatprep.subr.bf16.mxu1 %v766_v0 }
  0x78   : > { %551 = vmatpush3.bf16.msra.mxu1 %v631_v8 }
  0x79   : > { %552 = vmatprep.subr.bf16.mxu1 %v766_v0 }
  0x7c   : > { %553 = vmatpush3.bf16.msra.mxu1 %v632_v9 }
  0x7d   : > { %554 = vmatprep.subr.bf16.mxu1 %v766_v0 }
  0x80   : > { %555 = vmatpush3.bf16.msra.mxu1 %v633_v10 }
  0x81   : > { %556 = vmatprep.subr.bf16.mxu1 %v766_v0 }
  0x84   : > { %557 = vmatpush3.bf16.msra.mxu1 %v634_v11 }
 0x13e   : > { %v296_v13 = vpop.f32.mrb[0].mxu0 }
 0x13f   : > { %v297_v14 = vadd.f32 %v511_v12, %v296_v13  ;;  %v540_v15 = vpop.f32.mrb[1].mxu0 }
 0x140   : > { %v299_v16 = vpop.f32.mrb[2].mxu0 }
 0x141   : > { %v302_v17 = vmax.f32 %v297_v14, 0.0  ;;  %v541_v18 = vpop.f32.mrb[3].mxu0 }
 0x143   : > { %v303_v19 = vpack.c.bf16 %v302_v17, %v302_v17 }
 0x145   : > { %559 = vmatmul.mubr.bf16.vlgmr.msra.gmra.mrb[0].mxu1 %v303_v19 }
 0x218   : > { %v407_v21 = vpop.f32.mrb[0].mxu1 }
 0x219   : > { %v408_v22 = vadd.f32 %v514_v20, %v407_v21  ;;  %v560_v23 = vpop.f32.mrb[1].mxu1 }
 0x21a   : > { %v410_v24 = vpop.f32.mrb[2].mxu1 }
 0x21b   : > { %v413_v25 = vpack.c.bf16 %v408_v22, %v408_v22  ;;  %v561_v26 = vpop.f32.mrb[3].mxu1 }
 0x21d   : > { %414 = vst [vmem:[%s241_s22] sm:$0xf] %v413_v25 }
 0x21e PF: > { %p15_p9 = scmp.ge.s32.totalorder %s886_s5, 4   ;;  %s987_s15 = smov %s751_s16 }
 0x21f   : > { %s988_s16 = smov %s755_s17  ;;  %s989_s17 = smov %s897_s8 }
 0x220   : > { %s990_s18 = smov %s886_s5  ;;  %17 = sbr.rel (!%p15_p9) target bundleno = 4 (0x4), region = 84 }
 0x227   :  { %434 = vsyncpa [#allocation3], 1 }
 0x228   :  { %436 = vsyncpa [#allocation3 + $0x1], 1 }
 0x229   :  { %437 = vsyncpa [#allocation5], 1 }

</bundles_post_ra>
